<compile_context>
chip_gen: v5e
topology: v5e:2x2
jax: 0.10.0
libtpu: 0.0.40
codegen_flags: <defaults>
</compile_context>

<pallas_src>
import functools

import jax
import jax.numpy as jnp
from jax.experimental import pallas as pl
from jax.experimental.pallas import tpu as pltpu


# ---------------------------------------------------------------------------
# in-kernel helpers
# ---------------------------------------------------------------------------
def _layernorm(x, g, b, eps=1e-5):
    # PyTorch nn.LayerNorm semantics: biased variance over last dim, eps=1e-5.
    mu = jnp.mean(x, axis=-1, keepdims=True)
    var = jnp.mean((x - mu) ** 2, axis=-1, keepdims=True)
    return (x - mu) * jax.lax.rsqrt(var + eps) * g + b


def _silu(x):
    return x * jax.nn.sigmoid(x)


# ---------------------------------------------------------------------------
# fused ActionDecoder4 forward kernel (single grid point, operands in VMEM)
# ---------------------------------------------------------------------------
def _decoder_kernel(x_ref, p_ref, out_ref, *, in_ch, ch0, ch1, lanes,
                    wrows, vec_off):
    f32 = jnp.float32
    r_w01, r_w1, r_wh, r_gm, r_wb2 = wrows

    # --- packed weight blocks (static row slices of the (R, 128) slab) -----
    W01 = p_ref[r_w01:r_w01 + in_ch, 0:ch0]     # fused wv @ wo @ w0
    W1 = p_ref[r_w1:r_w1 + ch0, 0:ch1]          # linear[3]
    WH = p_ref[r_wh:r_wh + ch1, :]              # [hdmap|range|dec_boxes], lane-placed
    GM = p_ref[r_gm:r_gm + lanes, :]            # per-box mean-spread constant
    WB2 = p_ref[r_wb2:r_wb2 + lanes, :]         # block-diag dec_boxes2, lane-placed

    # --- packed bias / gain / mask rows -------------------------------------
    v = vec_off
    n1g = p_ref[v + 0:v + 1, 0:in_ch]           # norm1 gain
    n1b = p_ref[v + 1:v + 2, 0:in_ch]           # norm1 bias
    b01 = p_ref[v + 2:v + 3, 0:ch0]             # fused bo @ w0 + b0
    l1g = p_ref[v + 3:v + 4, 0:ch0]             # linear[2] LayerNorm gain
    l1b = p_ref[v + 4:v + 5, 0:ch0]             # linear[2] LayerNorm bias
    b1 = p_ref[v + 5:v + 6, 0:ch1]              # linear[3] bias
    bh = p_ref[v + 6:v + 7, :]                  # head bias, lane-placed
    gf = p_ref[v + 7:v + 8, :]                  # norm_boxes gain, lane-placed (0 elsewhere)
    bf = p_ref[v + 8:v + 9, :]                  # norm_boxes bias, lane-placed (0 elsewhere)
    bb2 = p_ref[v + 9:v + 10, :]                # dec_boxes2 bias, lane-placed
    hrm = p_ref[v + 10:v + 11, :]               # 1.0 on hdmap|range lanes, 0 elsewhere

    x = x_ref[...]                                                   # (B, in_ch)

    # norm1 + CrossAttention over a single token: softmax(·) == 1, so the
    # attention output is exactly V; wv/to_out/linear[0] are pre-fused into W01.
    # TODO(synk): to_out Dropout is identity in eval mode, intentionally omitted.
    xn = _layernorm(x, n1g, n1b)
    h = _silu(jnp.dot(xn, W01, preferred_element_type=f32) + b01)    # (B, ch0)
    h = _layernorm(h, l1g, l1b)
    h = _silu(jnp.dot(h, W1, preferred_element_type=f32) + b1)       # (B, ch1)

    # fused heads, lane-placed: [hdmap | range | boxes_flat | 0 pad] -> (B,128)
    head = jnp.dot(h, WH, preferred_element_type=f32) + bh

    # per-box LayerNorm(16) on the boxes_flat lanes, done at full 128-lane
    # width: GM spreads each box's mean over its own 16 lanes and is zero on
    # all non-box lanes, so hdmap/range/pad lanes never contaminate the stats.
    mu = jnp.dot(head, GM, preferred_element_type=f32)
    cen = head - mu
    var = jnp.dot(cen * cen, GM, preferred_element_type=f32)
    bn = cen * jax.lax.rsqrt(var + 1e-5) * gf + bf                   # 0 off-box

    # block-diagonal dec_boxes2 with output lane offsets baked in (boxes land
    # on lanes [2*out_hdmap, used), zeros elsewhere) -> ONE matmul, no concat.
    boxes = jnp.dot(bn, WB2, preferred_element_type=f32) + bb2

    # single unmasked lane-dense store: hdmap|range kept via mask + box lanes.
    out_ref[...] = head * hrm + boxes


# ---------------------------------------------------------------------------
# host-side parameter packing (done once, outside the hot path)
# ---------------------------------------------------------------------------
def pack_params(p, *, in_ch, ch0, ch1, out_hdmap, num_boxes, box_out):
    lanes = 128
    f32 = jnp.float32
    nb16 = num_boxes * 16
    nbo = num_boxes * box_out
    oh2 = 2 * out_hdmap
    used = oh2 + nbo
    # TODO(synk): configs with 2*out_hdmap + max(num_boxes*16, num_boxes*box_out)
    # > 128 need a wider output slab; not needed at these module sizes.
    assert oh2 + nb16 <= lanes and used <= lanes

    def pad_cols(w, width=lanes):
        return jnp.pad(w, ((0, 0), (0, width - w.shape[1])))

    def place_cols(w, start, width=lanes):
        return jnp.pad(w, ((0, 0), (start, width - start - w.shape[1])))

    # fused front-end: attention-V -> to_out -> linear[0] (no nonlinearity between)
    W01 = p["wv"] @ p["wo"] @ p["w0"]                      # (in_ch, ch0)
    b01 = p["bo"] @ p["w0"] + p["b0"]                      # (1, ch0)

    # fused head weight with output lane placement:
    # cols [0,oh2) = hdmap|range, cols [oh2, oh2+nb16) = dec_boxes (boxes_flat)
    W_head = jnp.zeros((ch1, lanes), f32)
    W_head = W_head.at[:, 0:out_hdmap].set(p["wh"])
    W_head = W_head.at[:, out_hdmap:oh2].set(p["wr"])
    W_head = W_head.at[:, oh2:oh2 + nb16].set(p["wb"])
    b_head = jnp.zeros((1, lanes), f32)
    b_head = b_head.at[:, 0:out_hdmap].set(p["bh"])
    b_head = b_head.at[:, out_hdmap:oh2].set(p["br"])
    b_head = b_head.at[:, oh2:oh2 + nb16].set(p["bb"])

    # per-box group-mean spread matrix (128x128), zero on non-box lanes
    lane = jnp.arange(lanes)
    in_box = (lane >= oh2) & (lane < oh2 + nb16)
    grp = (lane - oh2) // 16
    same = (grp[:, None] == grp[None, :]) & in_box[:, None] & in_box[None, :]
    G_spread = jnp.where(same, 1.0 / 16.0, 0.0).astype(f32)

    # norm_boxes gain/bias tiled onto the boxes_flat lanes (zero elsewhere)
    g_full = place_cols(jnp.tile(p["nb_g"], (1, num_boxes)), oh2)
    b_full = place_cols(jnp.tile(p["nb_b"], (1, num_boxes)), oh2)

    # dec_boxes2 as block-diagonal, rows = boxes_flat lanes, cols = output box lanes
    wb2_bd = jnp.kron(jnp.eye(num_boxes, dtype=f32), p["wb2"])       # (nb16, nbo)
    WB2_full = jnp.zeros((lanes, lanes), f32)
    WB2_full = WB2_full.at[oh2:oh2 + nb16, oh2:oh2 + nbo].set(wb2_bd)
    BB2_full = place_cols(jnp.tile(p["bb2"], (1, num_boxes)), oh2)

    # mask keeping only the hdmap|range lanes of `head` in the final sum
    hr_mask = (lane < oh2).astype(f32)[None, :]

    weight_blocks = [pad_cols(W01), pad_cols(p["w1"]), W_head, G_spread, WB2_full]
    vec_rows = [pad_cols(p["n1_g"]), pad_cols(p["n1_b"]), pad_cols(b01),
                pad_cols(p["ln1_g"]), pad_cols(p["ln1_b"]), pad_cols(p["b1"]),
                b_head, g_full, b_full, BB2_full, hr_mask]

    offs, rows, r = [], [], 0
    for blk in weight_blocks:
        offs.append(r)
        rows.append(blk)
        r += blk.shape[0]
    vec_off = r                                  # 8-aligned for these sizes
    rows.extend(vec_rows)
    slab = jnp.concatenate(rows, axis=0)         # (R, 128) single f32 slab
    return slab, tuple(offs), vec_off


# ---------------------------------------------------------------------------
# wrapper
# ---------------------------------------------------------------------------
def action_decoder4_forward(x, packed, *, in_ch, ch0, ch1,
                            out_hdmap, num_boxes, box_out):
    B = x.shape[0]
    slab, wrows, vec_off = packed
    lanes = 128
    used = 2 * out_hdmap + num_boxes * box_out

    kernel = functools.partial(
        _decoder_kernel,
        in_ch=in_ch, ch0=ch0, ch1=ch1, lanes=lanes,
        wrows=wrows, vec_off=vec_off,
    )

    flops = 2 * B * (in_ch * ch0 + ch0 * ch1 + ch1 * lanes + 3 * lanes * lanes)
    cost = pl.CostEstimate(
        flops=int(flops),
        transcendentals=int(B * (ch0 + ch1)),
        bytes_accessed=int(4 * (x.size + slab.size + B * lanes)),
    )

    vmem = lambda: pl.BlockSpec(memory_space=pltpu.MemorySpace.VMEM)
    # Single grid point: total footprint < 1 MiB, fits VMEM on v5e/v6e/v7x.
    # TODO(synk): if B grows (>=16), add a leading batch grid axis with 8-row
    # multiples per block and dimension_semantics=("parallel",) so v7x's
    # second TensorCore is used; a serial grid at B=2 is pure overhead.
    out = pl.pallas_call(
        kernel,
        out_shape=jax.ShapeDtypeStruct((B, lanes), jnp.float32),
        in_specs=[vmem(), vmem()],
        out_specs=vmem(),
        cost_estimate=cost,
    )(x, slab)

    hdmap = out[:, 0:out_hdmap]
    rimg = out[:, out_hdmap:2 * out_hdmap]
    boxes = out[:, 2 * out_hdmap:used].reshape(B, num_boxes, box_out)
    return hdmap, boxes, rimg


# ---------------------------------------------------------------------------
# deterministic parameter init (matches module __init__ shapes; ch has len 2)
# ---------------------------------------------------------------------------
def init_params(key, *, in_channels, ch, out_hdmap, out_boxes,
                num_boxes, num_heads, dim_head):
    inner = num_heads * dim_head
    ks = jax.random.split(key, 10)

    def lin(k, din, dout, s=0.02):
        kw, kb = jax.random.split(k)
        return (jax.random.normal(kw, (din, dout), jnp.float32) * s,
                jax.random.normal(kb, (1, dout), jnp.float32) * s)

    p = {}
    p["n1_g"] = jnp.ones((1, in_channels), jnp.float32)
    p["n1_b"] = jnp.zeros((1, in_channels), jnp.float32)
    p["wq"] = jax.random.normal(ks[0], (in_channels, inner), jnp.float32) * 0.02
    p["wk"] = jax.random.normal(ks[1], (in_channels, inner), jnp.float32) * 0.02
    p["wv"] = jax.random.normal(ks[2], (in_channels, inner), jnp.float32) * 0.02
    p["wo"], p["bo"] = lin(ks[3], inner, in_channels)
    p["w0"], p["b0"] = lin(ks[4], in_channels, ch[0])
    p["ln1_g"] = jnp.ones((1, ch[0]), jnp.float32)
    p["ln1_b"] = jnp.zeros((1, ch[0]), jnp.float32)
    p["w1"], p["b1"] = lin(ks[5], ch[0], ch[1])
    p["wh"], p["bh"] = lin(ks[6], ch[1], out_hdmap)
    p["wb"], p["bb"] = lin(ks[7], ch[1], num_boxes * 16)
    p["nb_g"] = jnp.ones((1, 16), jnp.float32)
    p["nb_b"] = jnp.zeros((1, 16), jnp.float32)
    p["wb2"], p["bb2"] = lin(ks[8], 16, out_boxes)
    p["wr"], p["br"] = lin(ks[9], ch[1], out_hdmap)
    return p


# ---------------------------------------------------------------------------
# pure-JAX reference (mirrors the PyTorch forward exactly, incl. attention)
# ---------------------------------------------------------------------------
def reference_forward(x, p, *, num_heads, dim_head, num_boxes, out_boxes):
    def ln(v, g, b, eps=1e-5):
        mu = v.mean(-1, keepdims=True)
        var = ((v - mu) ** 2).mean(-1, keepdims=True)
        return (v - mu) / jnp.sqrt(var + eps) * g + b

    B = x.shape[0]
    xn = ln(x, p["n1_g"], p["n1_b"])
    q = xn @ p["wq"]
    k = xn @ p["wk"]
    v = xn @ p["wv"]
    qh = q.reshape(B, num_heads, 1, dim_head)
    kh = k.reshape(B, num_heads, 1, dim_head)
    vh = v.reshape(B, num_heads, 1, dim_head)
    sim = jnp.einsum("bhid,bhjd->bhij", qh, kh) * (dim_head ** -0.5)
    attn = jax.nn.softmax(sim, axis=-1)
    out = jnp.einsum("bhij,bhjd->bhid", attn, vh).reshape(B, num_heads * dim_head)
    h = out @ p["wo"] + p["bo"]
    h = jax.nn.silu(h @ p["w0"] + p["b0"])
    h = ln(h, p["ln1_g"], p["ln1_b"])
    h = jax.nn.silu(h @ p["w1"] + p["b1"])
    hdmap = h @ p["wh"] + p["bh"]
    boxes = (h @ p["wb"] + p["bb"]).reshape(B, num_boxes, 16)
    boxes = ln(boxes, p["nb_g"], p["nb_b"])
    boxes = boxes @ p["wb2"] + p["bb2"]
    rimg = h @ p["wr"] + p["br"]
    return hdmap, boxes, rimg


if __name__ == "__main__":
    key = jax.random.PRNGKey(0)
    kx, kp = jax.random.split(key)

    B, IN_CH = 2, 32
    CH = (64, 32)
    OUT_HDMAP, OUT_BOXES = 16, 16
    NUM_BOXES = 4
    NUM_HEADS, DIM_HEAD = 2, 16   # inner_dim = 32
    HEIGHT, WIDTH = 8, 8          # stored on the module, unused by forward

    x = jax.random.normal(kx, (B, IN_CH), jnp.float32)
    params = init_params(kp, in_channels=IN_CH, ch=CH, out_hdmap=OUT_HDMAP,
                         out_boxes=OUT_BOXES, num_boxes=NUM_BOXES,
                         num_heads=NUM_HEADS, dim_head=DIM_HEAD)

    packed = pack_params(params, in_ch=IN_CH, ch0=CH[0], ch1=CH[1],
                         out_hdmap=OUT_HDMAP, num_boxes=NUM_BOXES,
                         box_out=OUT_BOXES)
    packed = jax.block_until_ready(packed)

    outs = action_decoder4_forward(x, packed, in_ch=IN_CH, ch0=CH[0], ch1=CH[1],
                                   out_hdmap=OUT_HDMAP, num_boxes=NUM_BOXES,
                                   box_out=OUT_BOXES)
    outs = jax.block_until_ready(outs)

    refs = reference_forward(x, params, num_heads=NUM_HEADS, dim_head=DIM_HEAD,
                             num_boxes=NUM_BOXES, out_boxes=OUT_BOXES)
    # slightly relaxed rtol: the host-side wv@wo@w0 fusion reassociates FP math
    for o, r in zip(outs, refs):
        assert o.shape == r.shape, (o.shape, r.shape)
        assert jnp.allclose(o, r, rtol=1e-4, atol=1e-5), \
            float(jnp.max(jnp.abs(o - r)))

    print("KERNEL_OK")
</pallas_src>

<mosaic_0001>
module attributes {stable_mosaic.version = 11 : i64} {
  func.func @_decoder_kernel(%arg0: memref<2x32xf32, #tpu.memory_space<vmem>>, %arg1: memref<395x128xf32, #tpu.memory_space<vmem>>, %arg2: memref<2x128xf32, #tpu.memory_space<vmem>>) attributes {dimension_semantics = [], scalar_prefetch = 0 : i64, scratch_operands = 0 : i64, tpu.core_type = #tpu.core_type<tc>} {
    %c0 = arith.constant 0 : index
    %c0_0 = arith.constant 0 : index
    %0 = vector.load %arg1[%c0, %c0_0] : memref<395x128xf32, #tpu.memory_space<vmem>>, vector<32x64xf32>
    %c32 = arith.constant 32 : index
    %c0_1 = arith.constant 0 : index
    %1 = vector.load %arg1[%c32, %c0_1] : memref<395x128xf32, #tpu.memory_space<vmem>>, vector<64x32xf32>
    %c96 = arith.constant 96 : index
    %c0_2 = arith.constant 0 : index
    %2 = vector.load %arg1[%c96, %c0_2] : memref<395x128xf32, #tpu.memory_space<vmem>>, vector<32x128xf32>
    %c128 = arith.constant 128 : index
    %c0_3 = arith.constant 0 : index
    %3 = vector.load %arg1[%c128, %c0_3] : memref<395x128xf32, #tpu.memory_space<vmem>>, vector<128x128xf32>
    %c256 = arith.constant 256 : index
    %c0_4 = arith.constant 0 : index
    %4 = vector.load %arg1[%c256, %c0_4] : memref<395x128xf32, #tpu.memory_space<vmem>>, vector<128x128xf32>
    %c384 = arith.constant 384 : index
    %c0_5 = arith.constant 0 : index
    %5 = vector.load %arg1[%c384, %c0_5] : memref<395x128xf32, #tpu.memory_space<vmem>>, vector<1x32xf32>
    %c385 = arith.constant 385 : index
    %c0_6 = arith.constant 0 : index
    %6 = vector.load %arg1[%c385, %c0_6] : memref<395x128xf32, #tpu.memory_space<vmem>>, vector<1x32xf32>
    %c386 = arith.constant 386 : index
    %c0_7 = arith.constant 0 : index
    %7 = vector.load %arg1[%c386, %c0_7] : memref<395x128xf32, #tpu.memory_space<vmem>>, vector<1x64xf32>
    %c387 = arith.constant 387 : index
    %c0_8 = arith.constant 0 : index
    %8 = vector.load %arg1[%c387, %c0_8] : memref<395x128xf32, #tpu.memory_space<vmem>>, vector<1x64xf32>
    %c388 = arith.constant 388 : index
    %c0_9 = arith.constant 0 : index
    %9 = vector.load %arg1[%c388, %c0_9] : memref<395x128xf32, #tpu.memory_space<vmem>>, vector<1x64xf32>
    %c389 = arith.constant 389 : index
    %c0_10 = arith.constant 0 : index
    %10 = vector.load %arg1[%c389, %c0_10] : memref<395x128xf32, #tpu.memory_space<vmem>>, vector<1x32xf32>
    %c390 = arith.constant 390 : index
    %c0_11 = arith.constant 0 : index
    %11 = vector.load %arg1[%c390, %c0_11] : memref<395x128xf32, #tpu.memory_space<vmem>>, vector<1x128xf32>
    %c391 = arith.constant 391 : index
    %c0_12 = arith.constant 0 : index
    %12 = vector.load %arg1[%c391, %c0_12] : memref<395x128xf32, #tpu.memory_space<vmem>>, vector<1x128xf32>
    %c392 = arith.constant 392 : index
    %c0_13 = arith.constant 0 : index
    %13 = vector.load %arg1[%c392, %c0_13] : memref<395x128xf32, #tpu.memory_space<vmem>>, vector<1x128xf32>
    %c393 = arith.constant 393 : index
    %c0_14 = arith.constant 0 : index
    %14 = vector.load %arg1[%c393, %c0_14] : memref<395x128xf32, #tpu.memory_space<vmem>>, vector<1x128xf32>
    %c394 = arith.constant 394 : index
    %c0_15 = arith.constant 0 : index
    %15 = vector.load %arg1[%c394, %c0_15] : memref<395x128xf32, #tpu.memory_space<vmem>>, vector<1x128xf32>
    %c0_16 = arith.constant 0 : index
    %c0_17 = arith.constant 0 : index
    %16 = vector.load %arg0[%c0_16, %c0_17] : memref<2x32xf32, #tpu.memory_space<vmem>>, vector<2x32xf32>
    %cst = arith.constant dense<0.000000e+00> : vector<2xf32>
    %17 = vector.multi_reduction <add>, %16, %cst [1] : vector<2x32xf32> to vector<2xf32>
    %18 = vector.shape_cast %17 : vector<2xf32> to vector<2x1xf32>
    %cst_18 = arith.constant 3.200000e+01 : f32
    %19 = vector.broadcast %cst_18 : f32 to vector<2x1xf32>
    %20 = arith.divf %18, %19 : vector<2x1xf32>
    %21 = vector.broadcast %20 : vector<2x1xf32> to vector<2x32xf32>
    %22 = arith.subf %16, %21 : vector<2x32xf32>
    %23 = arith.mulf %22, %22 : vector<2x32xf32>
    %cst_19 = arith.constant dense<0.000000e+00> : vector<2xf32>
    %24 = vector.multi_reduction <add>, %23, %cst_19 [1] : vector<2x32xf32> to vector<2xf32>
    %25 = vector.shape_cast %24 : vector<2xf32> to vector<2x1xf32>
    %cst_20 = arith.constant 3.200000e+01 : f32
    %26 = vector.broadcast %cst_20 : f32 to vector<2x1xf32>
    %27 = arith.divf %25, %26 : vector<2x1xf32>
    %28 = vector.broadcast %20 : vector<2x1xf32> to vector<2x32xf32>
    %29 = arith.subf %16, %28 : vector<2x32xf32>
    %cst_21 = arith.constant 9.99999974E-6 : f32
    %30 = vector.broadcast %cst_21 : f32 to vector<2x1xf32>
    %31 = arith.addf %27, %30 : vector<2x1xf32>
    %32 = math.rsqrt %31 : vector<2x1xf32>
    %33 = vector.broadcast %32 : vector<2x1xf32> to vector<2x32xf32>
    %34 = arith.mulf %29, %33 : vector<2x32xf32>
    %35 = vector.broadcast %5 : vector<1x32xf32> to vector<2x32xf32>
    %36 = arith.mulf %34, %35 : vector<2x32xf32>
    %37 = vector.broadcast %6 : vector<1x32xf32> to vector<2x32xf32>
    %38 = arith.addf %36, %37 : vector<2x32xf32>
    %cst_22 = arith.constant dense<0.000000e+00> : vector<2x64xf32>
    %39 = tpu.matmul %38, %0, %cst_22 {dimension_numbers = #tpu.dot_dimension_numbers<[1], [0], [0], [1], [0, 0, 1, 1], [], []>} : vector<2x32xf32>, vector<32x64xf32>, vector<2x64xf32> -> vector<2x64xf32>
    %40 = vector.broadcast %7 : vector<1x64xf32> to vector<2x64xf32>
    %41 = arith.addf %39, %40 : vector<2x64xf32>
    %42 = arith.negf %41 : vector<2x64xf32>
    %43 = math.exp %42 : vector<2x64xf32>
    %cst_23 = arith.constant 1.000000e+00 : f32
    %44 = vector.broadcast %cst_23 : f32 to vector<2x64xf32>
    %45 = arith.addf %44, %43 : vector<2x64xf32>
    %46 = arith.divf %44, %45 : vector<2x64xf32>
    %47 = arith.mulf %41, %46 : vector<2x64xf32>
    %cst_24 = arith.constant dense<0.000000e+00> : vector<2xf32>
    %48 = vector.multi_reduction <add>, %47, %cst_24 [1] : vector<2x64xf32> to vector<2xf32>
    %49 = vector.shape_cast %48 : vector<2xf32> to vector<2x1xf32>
    %cst_25 = arith.constant 6.400000e+01 : f32
    %50 = vector.broadcast %cst_25 : f32 to vector<2x1xf32>
    %51 = arith.divf %49, %50 : vector<2x1xf32>
    %52 = vector.broadcast %51 : vector<2x1xf32> to vector<2x64xf32>
    %53 = arith.subf %47, %52 : vector<2x64xf32>
    %54 = arith.mulf %53, %53 : vector<2x64xf32>
    %cst_26 = arith.constant dense<0.000000e+00> : vector<2xf32>
    %55 = vector.multi_reduction <add>, %54, %cst_26 [1] : vector<2x64xf32> to vector<2xf32>
    %56 = vector.shape_cast %55 : vector<2xf32> to vector<2x1xf32>
    %cst_27 = arith.constant 6.400000e+01 : f32
    %57 = vector.broadcast %cst_27 : f32 to vector<2x1xf32>
    %58 = arith.divf %56, %57 : vector<2x1xf32>
    %59 = vector.broadcast %51 : vector<2x1xf32> to vector<2x64xf32>
    %60 = arith.subf %47, %59 : vector<2x64xf32>
    %cst_28 = arith.constant 9.99999974E-6 : f32
    %61 = vector.broadcast %cst_28 : f32 to vector<2x1xf32>
    %62 = arith.addf %58, %61 : vector<2x1xf32>
    %63 = math.rsqrt %62 : vector<2x1xf32>
    %64 = vector.broadcast %63 : vector<2x1xf32> to vector<2x64xf32>
    %65 = arith.mulf %60, %64 : vector<2x64xf32>
    %66 = vector.broadcast %8 : vector<1x64xf32> to vector<2x64xf32>
    %67 = arith.mulf %65, %66 : vector<2x64xf32>
    %68 = vector.broadcast %9 : vector<1x64xf32> to vector<2x64xf32>
    %69 = arith.addf %67, %68 : vector<2x64xf32>
    %cst_29 = arith.constant dense<0.000000e+00> : vector<2x32xf32>
    %70 = tpu.matmul %69, %1, %cst_29 {dimension_numbers = #tpu.dot_dimension_numbers<[1], [0], [0], [1], [0, 0, 1, 1], [], []>} : vector<2x64xf32>, vector<64x32xf32>, vector<2x32xf32> -> vector<2x32xf32>
    %71 = vector.broadcast %10 : vector<1x32xf32> to vector<2x32xf32>
    %72 = arith.addf %70, %71 : vector<2x32xf32>
    %73 = arith.negf %72 : vector<2x32xf32>
    %74 = math.exp %73 : vector<2x32xf32>
    %cst_30 = arith.constant 1.000000e+00 : f32
    %75 = vector.broadcast %cst_30 : f32 to vector<2x32xf32>
    %76 = arith.addf %75, %74 : vector<2x32xf32>
    %77 = arith.divf %75, %76 : vector<2x32xf32>
    %78 = arith.mulf %72, %77 : vector<2x32xf32>
    %cst_31 = arith.constant dense<0.000000e+00> : vector<2x128xf32>
    %79 = tpu.matmul %78, %2, %cst_31 {dimension_numbers = #tpu.dot_dimension_numbers<[1], [0], [0], [1], [0, 0, 1, 1], [], []>} : vector<2x32xf32>, vector<32x128xf32>, vector<2x128xf32> -> vector<2x128xf32>
    %80 = vector.broadcast %11 : vector<1x128xf32> to vector<2x128xf32>
    %81 = arith.addf %79, %80 : vector<2x128xf32>
    %cst_32 = arith.constant dense<0.000000e+00> : vector<2x128xf32>
    %82 = tpu.matmul %81, %3, %cst_32 {dimension_numbers = #tpu.dot_dimension_numbers<[1], [0], [0], [1], [0, 0, 1, 1], [], []>} : vector<2x128xf32>, vector<128x128xf32>, vector<2x128xf32> -> vector<2x128xf32>
    %83 = arith.subf %81, %82 : vector<2x128xf32>
    %84 = arith.mulf %83, %83 : vector<2x128xf32>
    %cst_33 = arith.constant dense<0.000000e+00> : vector<2x128xf32>
    %85 = tpu.matmul %84, %3, %cst_33 {dimension_numbers = #tpu.dot_dimension_numbers<[1], [0], [0], [1], [0, 0, 1, 1], [], []>} : vector<2x128xf32>, vector<128x128xf32>, vector<2x128xf32> -> vector<2x128xf32>
    %cst_34 = arith.constant 9.99999974E-6 : f32
    %86 = vector.broadcast %cst_34 : f32 to vector<2x128xf32>
    %87 = arith.addf %85, %86 : vector<2x128xf32>
    %88 = math.rsqrt %87 : vector<2x128xf32>
    %89 = arith.mulf %83, %88 : vector<2x128xf32>
    %90 = vector.broadcast %12 : vector<1x128xf32> to vector<2x128xf32>
    %91 = arith.mulf %89, %90 : vector<2x128xf32>
    %92 = vector.broadcast %13 : vector<1x128xf32> to vector<2x128xf32>
    %93 = arith.addf %91, %92 : vector<2x128xf32>
    %cst_35 = arith.constant dense<0.000000e+00> : vector<2x128xf32>
    %94 = tpu.matmul %93, %4, %cst_35 {dimension_numbers = #tpu.dot_dimension_numbers<[1], [0], [0], [1], [0, 0, 1, 1], [], []>} : vector<2x128xf32>, vector<128x128xf32>, vector<2x128xf32> -> vector<2x128xf32>
    %95 = vector.broadcast %14 : vector<1x128xf32> to vector<2x128xf32>
    %96 = arith.addf %94, %95 : vector<2x128xf32>
    %97 = vector.broadcast %15 : vector<1x128xf32> to vector<2x128xf32>
    %98 = arith.mulf %81, %97 : vector<2x128xf32>
    %99 = arith.addf %98, %96 : vector<2x128xf32>
    %c0_36 = arith.constant 0 : index
    %c0_37 = arith.constant 0 : index
    %100 = vector.load %arg2[%c0_36, %c0_37] : memref<2x128xf32, #tpu.memory_space<vmem>>, vector<2x128xf32>
    tpu.vector_store %arg2[%c0_36, %c0_37], %99 {strides = array<i32>} : memref<2x128xf32, #tpu.memory_space<vmem>>, vector<2x128xf32>,
    return
  }
}

</mosaic_0001>

<bundles_post_ra>
// kernel: tpu_custom_call.1
= control target key start
LH: loop header
LB: loop body
LE: loop exit
PB: predicated region body
PF: predicated region fallthrough
CT: control target
= control target key end

     0   :  { %7 = vsyncpa [#allocation3], 0  ;;  %s549_s0 = inlined_call_operand.hbm [shape: f32[2,32], index: 0, kind: input, shape index: {}]   ;;  %s550_s1 = inlined_call_operand.hbm [shape: f32[395,128], index: 1, kind: input, shape index: {}]   ;;  %s551_s2 = inlined_call_operand.hbm [shape: f32[2,128], index: 2, kind: output, shape index: {}]  }
   0x1   :  { %8 = vsyncpa [#allocation6], 0 }
   0x2   :  { %9 = vsyncpa [#allocation4], 0  ;;  %s15_s11 = sshll.u32 %s549_s0, 4  ;;  %s503_s12 = smov [#allocation2]   ;;  %s16_s11 = int_to_ptr.hbm [resolvable:$true] %s15_s11 }
   0x3   :  { %s17_s13 = sshll.u32 %s503_s12, 4  ;;  %s25_s16 = sshll.u32 %s550_s1, 4  ;;  %s18_s13 = int_to_ptr.vmem [resolvable:$true] %s17_s13  ;;  %s26_s16 = int_to_ptr.hbm [resolvable:$true] %s25_s16 }
   0x4   :  { %20 = dma.hbm_to_vmem [thread:$0]  %s16_s11, 32, %s18_s13, [#allocation3]  }
   0x5   :  { %s504_s17 = smov [#allocation5]   ;;  %s505_s19 = smov 128  }
   0x6   :  { %s27_s18 = sshll.u32 %s504_s17, 4  ;;  %s506_s20 = smov 8   ;;  %s28_s18 = int_to_ptr.vmem [resolvable:$true] %s27_s18 }
   0x7   :  { %33 = dma.hbm_to_vmem [thread:$0]  %s26_s16, 6400, %s28_s18, [#allocation6], %s505_s19, %s505_s19, %s506_s20  }
   0x8   :  { %497 = dma.done.wait [#allocation3], 32  }
   0x9   :  { %498 = vsyncadd [#allocation3], 4294967264 }
   0xa   :  { %499 = dma.done.wait [#allocation6], 6400  }
   0xb   :  { %500 = vsyncadd [#allocation6], 4294960896  ;;  %vm102_vm0 = vcmask 254976   ;;  %v101_v0 = vld [vmem:[#allocation2] sm:$0x3]  ;;  %v507_v2 = vmov 32.0  }
   0xc   :  { %v103_v1 = vsel %vm102_vm0, %v101_v0, 0.0  ;;  %407 = vrcp.f32 %v507_v2  ;;  %v45_v14 = vld [vmem:[#allocation5 + $0x18] sm:$0xff]  ;;  %v44_v15 = vld [vmem:[#allocation5 + $0x10] sm:$0xff]  ;;  %v43_v16 = vld [vmem:[#allocation5 + $0x8] sm:$0xff]  ;;  %vm137_vm5 = vcmask 261120   ;;  %vm181_vm10 = vcmask 517120  }
   0xd   :  { %104 = vadd.xlane.f32.xlu0 %v103_v1  ;;  %153 = vmatpush.msra.mxu1 %v45_v14  ;;  %v42_v17 = vld [vmem:[#allocation5] sm:$0xff]  ;;  %v508_v51 = vmov 64.0   ;;  %v53_v63 = vld [vmem:[#allocation5 + $0x58] sm:$0xff]  ;;  %v51_v1 = vld [vmem:[#allocation5 + $0x48] sm:$0xff]  ;;  %vm216_vm15 = vcmask 523264   ;;  %s509_s0 = smov [#allocation7]  }
   0xe   :  { %v396_v27 = vld [vmem:[#allocation5 + $0x180] ss:$0 sm:$0xff]  ;;  %v397_v30 = vld [vmem:[#allocation5 + $0x181] ss:$0 sm:$0xff]  ;;  %v398_v33 = vld [vmem:[#allocation5 + $0x182] ss:$0 sm:$0xff] }
   0xf   :  { %154 = vmatpush.msra.mxu1 %v44_v15  ;;  %v50_v2 = vld [vmem:[#allocation5 + $0x40] sm:$0xff]  ;;  %s371_s1 = sshll.u32 %s509_s0, 4  ;;  %s373_s23 = sshll.u32 %s551_s2, 4  ;;  %s372_s1 = int_to_ptr.vmem [resolvable:$true] %s371_s1  ;;  %s374_s23 = int_to_ptr.hbm [resolvable:$true] %s373_s23 }
  0x11   :  { %155 = vmatpush.msra.mxu1 %v43_v16  ;;  %v399_v16 = vld [vmem:[#allocation5 + $0x183] ss:$0 sm:$0xff] }
  0x12   :  { %v408_v3 = vpop.eup %407 }
  0x13   :  { %v107_v4 = vmul.f32 32.0, %v408_v3  ;;  %vm111_vm1 = vweird.f32 %v408_v3  ;;  %156 = vmatpush.msra.mxu1 %v42_v17 }
  0x15   :  { %v108_v5 = vsub.f32 1.0, %v107_v4  ;;  %228 = vmatpush.msrb.mxu1 %v53_v63  ;;  %v48_v4 = vld [vmem:[#allocation5 + $0x30] sm:$0xff] }
  0x16   :  { %v88_v63 = vld [vmem:[#allocation5 + $0x170] sm:$0xff] }
  0x17   :  { %v109_v6 = vmul.f32 %v408_v3, %v108_v5  ;;  %v47_v5 = vld [vmem:[#allocation5 + $0x28] sm:$0xff] }
  0x19   :  { %v110_v7 = vadd.f32 %v408_v3, %v109_v6  ;;  %v46_v6 = vld [vmem:[#allocation5 + $0x20] sm:$0xff] }
  0x1b   :  { %v112_v8 = vsel %vm111_vm1, %v408_v3, %v110_v7  ;;  %v49_v3 = vld [vmem:[#allocation5 + $0x38] sm:$0xff] }
  0x80   :  { %v105_v9 = vpop.xlane.xlu0 %104 }
  0x81   :  { %v113_v10 = vmul.f32 %v112_v8, %v105_v9 }
  0x83   :  { %v114_v11 = vsub.f32 %v101_v0, %v113_v10  ;;  %v52_v0 = vld [vmem:[#allocation5 + $0x50] sm:$0xff] }
  0x84   :  { %229 = vmatpush.msrb.mxu1 %v52_v0 }
  0x85   :  { %v115_v12 = vmul.f32 %v114_v11, %v114_v11 }
  0x86   :  { %230 = vmatpush.msrb.mxu1 %v51_v1 }
  0x87   :  { %v116_v13 = vsel %vm102_vm0, %v115_v12, 0.0 }
  0x88   :  { %117 = vadd.xlane.f32.xlu0 %v116_v13  ;;  %231 = vmatpush.msrb.mxu1 %v50_v2 }
  0x8a   :  { %232 = vmatpush.msrb.mxu1 %v49_v3  ;;  %v87_v3 = vld [vmem:[#allocation5 + $0x168] sm:$0xff] }
  0x8c   :  { %233 = vmatpush.msrb.mxu1 %v48_v4  ;;  %v86_v4 = vld [vmem:[#allocation5 + $0x160] sm:$0xff] }
  0x8e   :  { %234 = vmatpush.msrb.mxu1 %v47_v5  ;;  %v85_v5 = vld [vmem:[#allocation5 + $0x158] sm:$0xff] }
  0x90   :  { %235 = vmatpush.msrb.mxu1 %v46_v6  ;;  %v84_v6 = vld [vmem:[#allocation5 + $0x150] sm:$0xff] }
  0xfb   :  { %v118_v18 = vpop.xlane.xlu0 %117 }
  0xfc   :  { %v119_v19 = vmul.f32 %v118_v18, %v112_v8 }
  0xfe   :  { %v120_v20 = vadd.f32 1e-05, %v119_v19  ;;  %v400_v19 = vld [vmem:[#allocation5 + $0x184] ss:$0 sm:$0xff] }
 0x100   :  { %409 = vrsqrt.f32 %v120_v20  ;;  %vm127_vm3 = vweird.f32 %v120_v20 }
 0x106   :  { %v410_v21 = vpop.eup %409 }
 0x107   :  { %v122_v22 = vmul.f32 %v410_v21, %v120_v20  ;;  %vm128_vm2 = vweird.f32 %v410_v21 }
 0x108   :  { %vm129_vm4 = vmor %vm127_vm3, %vm128_vm2 }
 0x109   :  { %v123_v23 = vmul.f32 %v410_v21, %v122_v22  ;;  %v57_v22 = vld [vmem:[#allocation5 + $0x78] sm:$0xff] }
 0x10b   :  { %v124_v24 = vmul.f32 0.5, %v123_v23  ;;  %v56_v23 = vld [vmem:[#allocation5 + $0x70] sm:$0xff] }
 0x10d   :  { %v125_v25 = vsub.f32 1.5, %v124_v24  ;;  %v401_v24 = vld [vmem:[#allocation5 + $0x185] ss:$0 sm:$0xff] }
 0x10f   :  { %v126_v26 = vmul.f32 %v410_v21, %v125_v25  ;;  %v55_v25 = vld [vmem:[#allocation5 + $0x68] sm:$0xff] }
 0x111   :  { %v130_v28 = vsel %vm129_vm4, %v410_v21, %v126_v26  ;;  %v54_v26 = vld [vmem:[#allocation5 + $0x60] sm:$0xff] }
 0x112   :  { %v131_v29 = vmul.f32 %v130_v28, %v114_v11 }
 0x114   :  { %v133_v31 = vmul.f32 %v396_v27, %v131_v29  ;;  %v73_v29 = vld [vmem:[#allocation5 + $0xf8] sm:$0xff] }
 0x115   :  { %284 = vmatpush.msra.mxu3 %v73_v29  ;;  %306 = vmatpush.msra.mxu0 %v73_v29 }
 0x116   :  { %v135_v32 = vadd.f32 %v397_v30, %v133_v31  ;;  %v72_v30 = vld [vmem:[#allocation5 + $0xf0] sm:$0xff] }
 0x117   :  { %285 = vmatpush.msra.mxu3 %v72_v30  ;;  %307 = vmatpush.msra.mxu0 %v72_v30 }
 0x118   :  { %384 = vmatmul.msk.f32.vlgmr.msra.gmra.mxu1 %vm137_vm5, %v135_v32  ;;  %v71_v32 = vld [vmem:[#allocation5 + $0xe8] sm:$0xff] }
 0x119   :  { %276 = vmatpush.msra.mxu1 %v57_v22  ;;  %286 = vmatpush.msra.mxu3 %v71_v32 }
 0x11a   :  { %308 = vmatpush.msra.mxu0 %v71_v32  ;;  %v406_v32 = vld [vmem:[#allocation5 + $0x18a] ss:$0 sm:$0xff] }
 0x11b   :  { %277 = vmatpush.msra.mxu1 %v56_v23 }
 0x11d   :  { %278 = vmatpush.msra.mxu1 %v55_v25  ;;  %v403_v25 = vld [vmem:[#allocation5 + $0x187] ss:$0 sm:$0xff] }
 0x11f   :  { %279 = vmatpush.msra.mxu1 %v54_v26 }
 0x195   :  { %v158_v34 = vpop.f32.mrf.mxu1 }
 0x196   :  { %v159_v35 = vadd.f32 %v398_v33, %v158_v34  ;;  %v70_v33 = vld [vmem:[#allocation5 + $0xe0] sm:$0xff]  ;;  %v69_v34 = vld [vmem:[#allocation5 + $0xd8] sm:$0xff] }
 0x197   :  { %287 = vmatpush.msra.mxu3 %v70_v33  ;;  %309 = vmatpush.msra.mxu0 %v70_v33 }
 0x198   :  { %v385_v36 = vmul.f32 -1.442695, %v159_v35 }
 0x199   :  { %288 = vmatpush.msra.mxu3 %v69_v34  ;;  %310 = vmatpush.msra.mxu0 %v69_v34 }
 0x19a   :  { %411 = vpow2.f32 %v385_v36 }
 0x1a0   :  { %v412_v37 = vpop.eup %411 }
 0x1a1   :  { %v164_v38 = vadd.f32 1.0, %v412_v37  ;;  %v67_v37 = vld [vmem:[#allocation5 + $0xc8] sm:$0xff] }
 0x1a3   :  { %413 = vrcp.f32 %v164_v38  ;;  %v176_v42 = vand.u32 2147483648, %v164_v38  ;;  %v174_v44 = vand.u32 2147483647, %v164_v38  ;;  %vm170_vm7 = vweird.f32 %v164_v38 }
 0x1a4   :  { %415 = vrcp.f32 %v508_v51  ;;  %v60_v51 = vld [vmem:[#allocation5 + $0x90] sm:$0xff] }
 0x1a5   :  { %v177_v46 = vor.u32 1.1754944e-38, %v176_v42  ;;  %vm175_vm9 = vcmp.eq.f32.partialorder %v174_v44, 8.507059e+37  ;;  %v63_v42 = vld [vmem:[#allocation5 + $0xa8] sm:$0xff] }
 0x1a9   :  { %v414_v39 = vpop.eup %413 }
 0x1aa   :  { %v166_v40 = vmul.f32 %v414_v39, %v164_v38  ;;  %vm171_vm6 = vweird.f32 %v414_v39  ;;  %v416_v52 = vpop.eup %415 }
 0x1ab   :  { %vm172_vm8 = vmor %vm170_vm7, %vm171_vm6  ;;  %v186_v53 = vmul.f32 64.0, %v416_v52  ;;  %vm190_vm11 = vweird.f32 %v416_v52 }
 0x1ac   :  { %v167_v41 = vsub.f32 1.0, %v166_v40  ;;  %v65_v40 = vld [vmem:[#allocation5 + $0xb8] sm:$0xff] }
 0x1ad   :  { %v187_v54 = vsub.f32 1.0, %v186_v53 }
 0x1ae   :  { %v168_v43 = vmul.f32 %v414_v39, %v167_v41  ;;  %v64_v41 = vld [vmem:[#allocation5 + $0xb0] sm:$0xff] }
 0x1af   :  { %v188_v55 = vmul.f32 %v416_v52, %v187_v54 }
 0x1b0   :  { %v169_v45 = vadd.f32 %v414_v39, %v168_v43 }
 0x1b1   :  { %v189_v56 = vadd.f32 %v416_v52, %v188_v55 }
 0x1b2   :  { %v173_v47 = vsel %vm172_vm8, %v414_v39, %v169_v45  ;;  %v66_v39 = vld [vmem:[#allocation5 + $0xc0] sm:$0xff] }
 0x1b3   :  { %v178_v48 = vsel %vm175_vm9, %v177_v46, %v173_v47  ;;  %v191_v57 = vsel %vm190_vm11, %v416_v52, %v189_v56  ;;  %v62_v45 = vld [vmem:[#allocation5 + $0xa0] sm:$0xff]  ;;  %v61_v47 = vld [vmem:[#allocation5 + $0x98] sm:$0xff] }
 0x1b4   :  { %v180_v49 = vmul.f32 %v178_v48, %v159_v35  ;;  %v68_v35 = vld [vmem:[#allocation5 + $0xd0] sm:$0xff] }
 0x1b5   :  { %289 = vmatpush.msra.mxu3 %v68_v35  ;;  %311 = vmatpush.msra.mxu0 %v68_v35 }
 0x1b6   :  { %v182_v50 = vsel %vm181_vm10, %v180_v49, 0.0 }
 0x1b7   :  { %183 = vadd.xlane.f32.xlu1 %v182_v50  ;;  %290 = vmatpush.msra.mxu3 %v67_v37 }
 0x1b8   :  { %312 = vmatpush.msra.mxu0 %v67_v37 }
 0x1b9   :  { %291 = vmatpush.msra.mxu3 %v66_v39 }
 0x1ba   :  { %313 = vmatpush.msra.mxu0 %v66_v39 }
 0x1bb   :  { %292 = vmatpush.msra.mxu3 %v65_v40 }
 0x1bc   :  { %314 = vmatpush.msra.mxu0 %v65_v40 }
 0x1bd   :  { %293 = vmatpush.msra.mxu3 %v64_v41 }
 0x1be   :  { %315 = vmatpush.msra.mxu0 %v64_v41 }
 0x1bf   :  { %294 = vmatpush.msra.mxu3 %v63_v42 }
 0x1c0   :  { %316 = vmatpush.msra.mxu0 %v63_v42 }
 0x1c1   :  { %295 = vmatpush.msra.mxu3 %v62_v45 }
 0x1c2   :  { %317 = vmatpush.msra.mxu0 %v62_v45 }
 0x1c3   :  { %296 = vmatpush.msra.mxu3 %v61_v47 }
 0x1c4   :  { %318 = vmatpush.msra.mxu0 %v61_v47 }
 0x1c5   :  { %297 = vmatpush.msra.mxu3 %v60_v51 }
 0x1c6   :  { %319 = vmatpush.msra.mxu0 %v60_v51 }
 0x22a   :  { %v184_v58 = vpop.xlane.xlu1 %183 }
 0x22b   :  { %v192_v59 = vmul.f32 %v191_v57, %v184_v58  ;;  %v58_v58 = vld [vmem:[#allocation5 + $0x80] sm:$0xff] }
 0x22d   :  { %v193_v60 = vsub.f32 %v180_v49, %v192_v59  ;;  %v402_v59 = vld [vmem:[#allocation5 + $0x186] ss:$0 sm:$0xff] }
 0x22f   :  { %v194_v61 = vmul.f32 %v193_v60, %v193_v60 }
 0x231   :  { %v195_v62 = vsel %vm181_vm10, %v194_v61, 0.0 }
 0x232   :  { %196 = vadd.xlane.f32.xlu1 %v195_v62  ;;  %v89_v62 = vld [vmem:[#allocation5 + $0x178] sm:$0xff] }
 0x233   :  { %342 = vmatpush.msra.mxu2 %v89_v62 }
 0x235   :  { %343 = vmatpush.msra.mxu2 %v88_v63 }
 0x237   :  { %344 = vmatpush.msra.mxu2 %v87_v3 }
 0x239   :  { %345 = vmatpush.msra.mxu2 %v86_v4 }
 0x23b   :  { %346 = vmatpush.msra.mxu2 %v85_v5 }
 0x23d   :  { %347 = vmatpush.msra.mxu2 %v84_v6 }
 0x2a5   :  { %v197_v7 = vpop.xlane.xlu1 %196 }
 0x2a6   :  { %v198_v8 = vmul.f32 %v197_v7, %v191_v57  ;;  %v59_v57 = vld [vmem:[#allocation5 + $0x88] sm:$0xff] }
 0x2a7   :  { %298 = vmatpush.msra.mxu3 %v59_v57  ;;  %320 = vmatpush.msra.mxu0 %v59_v57  ;;  %v83_v7 = vld [vmem:[#allocation5 + $0x148] sm:$0xff] }
 0x2a8   :  { %v199_v9 = vadd.f32 1e-05, %v198_v8  ;;  %348 = vmatpush.msra.mxu2 %v83_v7  ;;  %v82_v8 = vld [vmem:[#allocation5 + $0x140] sm:$0xff] }
 0x2a9   :  { %299 = vmatpush.msra.mxu3 %v58_v58  ;;  %321 = vmatpush.msra.mxu0 %v58_v58 }
 0x2aa   :  { %417 = vrsqrt.f32 %v199_v9  ;;  %vm206_vm13 = vweird.f32 %v199_v9  ;;  %349 = vmatpush.msra.mxu2 %v82_v8 }
 0x2b0   :  { %v418_v10 = vpop.eup %417 }
 0x2b1   :  { %v201_v11 = vmul.f32 %v418_v10, %v199_v9  ;;  %vm207_vm12 = vweird.f32 %v418_v10  ;;  %v81_v9 = vld [vmem:[#allocation5 + $0x138] sm:$0xff] }
 0x2b2   :  { %vm208_vm14 = vmor %vm206_vm13, %vm207_vm12  ;;  %350 = vmatpush.msra.mxu2 %v81_v9 }
 0x2b3   :  { %v202_v12 = vmul.f32 %v418_v10, %v201_v11  ;;  %v79_v11 = vld [vmem:[#allocation5 + $0x128] sm:$0xff] }
 0x2b5   :  { %v203_v13 = vmul.f32 0.5, %v202_v12  ;;  %v78_v12 = vld [vmem:[#allocation5 + $0x120] sm:$0xff] }
 0x2b7   :  { %v204_v14 = vsub.f32 1.5, %v203_v13  ;;  %v77_v13 = vld [vmem:[#allocation5 + $0x118] sm:$0xff] }
 0x2b9   :  { %v205_v15 = vmul.f32 %v418_v10, %v204_v14  ;;  %v76_v14 = vld [vmem:[#allocation5 + $0x110] sm:$0xff] }
 0x2bb   :  { %v209_v17 = vsel %vm208_vm14, %v418_v10, %v205_v15  ;;  %v80_v10 = vld [vmem:[#allocation5 + $0x130] sm:$0xff]  ;;  %v75_v15 = vld [vmem:[#allocation5 + $0x108] sm:$0xff] }
 0x2bc   :  { %v210_v18 = vmul.f32 %v209_v17, %v193_v60  ;;  %351 = vmatpush.msra.mxu2 %v80_v10 }
 0x2be   :  { %v212_v20 = vmul.f32 %v399_v16, %v210_v18  ;;  %352 = vmatpush.msra.mxu2 %v79_v11  ;;  %v74_v16 = vld [vmem:[#allocation5 + $0x100] sm:$0xff] }
 0x2c0   :  { %v214_v21 = vadd.f32 %v400_v19, %v212_v20  ;;  %353 = vmatpush.msra.mxu2 %v78_v12 }
 0x2c2   :  { %386 = vmatmul.msk.f32.vlgmr.msrb.gmra.mxu1 %vm216_vm15, %v214_v21  ;;  %354 = vmatpush.msra.mxu2 %v77_v13 }
 0x2c4   :  { %355 = vmatpush.msra.mxu2 %v76_v14 }
 0x2c6   :  { %356 = vmatpush.msra.mxu2 %v75_v15 }
 0x2c8   :  { %357 = vmatpush.msra.mxu2 %v74_v16 }
 0x33f   :  { %v237_v27 = vpop.f32.mrf.mxu1 }
 0x340   :  { %v536_v28 = vadd.f32 %v401_v24, %v237_v27 }
 0x342   :  { %v387_v31 = vmul.f32 -1.442695, %v536_v28 }
 0x344   :  { %419 = vpow2.f32 %v387_v31  ;;  %v405_v31 = vld [vmem:[#allocation5 + $0x189] ss:$0 sm:$0xff] }
 0x34a   :  { %v420_v36 = vpop.eup %419 }
 0x34b   :  { %v243_v38 = vadd.f32 1.0, %v420_v36 }
 0x34d   :  { %421 = vrcp.f32 %v243_v38  ;;  %v255_v48 = vand.u32 2147483648, %v243_v38  ;;  %v253_v50 = vand.u32 2147483647, %v243_v38  ;;  %vm249_vm1 = vweird.f32 %v243_v38 }
 0x34f   :  { %v256_v53 = vor.u32 1.1754944e-38, %v255_v48  ;;  %vm254_vm3 = vcmp.eq.f32.partialorder %v253_v50, 8.507059e+37 }
 0x353   :  { %v422_v43 = vpop.eup %421 }
 0x354   :  { %v245_v44 = vmul.f32 %v422_v43, %v243_v38  ;;  %vm250_vm0 = vweird.f32 %v422_v43 }
 0x355   :  { %vm251_vm2 = vmor %vm249_vm1, %vm250_vm0 }
 0x356   :  { %v246_v46 = vsub.f32 1.0, %v245_v44 }
 0x358   :  { %v247_v49 = vmul.f32 %v422_v43, %v246_v46 }
 0x35a   :  { %v248_v52 = vadd.f32 %v422_v43, %v247_v49 }
 0x35c   :  { %v252_v54 = vsel %vm251_vm2, %v422_v43, %v248_v52 }
 0x35d   :  { %v257_v55 = vsel %vm254_vm3, %v256_v53, %v252_v54 }
 0x35e   :  { %v259_v56 = vmul.f32 %v257_v55, %v536_v28  ;;  %v404_v28 = vld [vmem:[#allocation5 + $0x188] ss:$0 sm:$0xff] }
 0x360   :  { %388 = vmatmul.msk.f32.vlgmr.msra.gmra.mxu1 %vm137_vm5, %v259_v56 }
 0x3dd   :  { %v281_v60 = vpop.f32.mrf.mxu1 }
 0x3de   :  { %v541_v61 = vadd.f32 %v402_v59, %v281_v60 }
 0x3e0   :  { %300 = vmatmul.f32.vlgmr.msra.gmra.mxu3 %v541_v61  ;;  %v363_v35 = vmul.f32 %v406_v32, %v541_v61 }
 0x463   :  { %v301_v0 = vpop.f32.mrf.mxu3 }
 0x464   :  { %v304_v1 = vsub.f32 %v541_v61, %v301_v0 }
 0x466   :  { %v305_v2 = vmul.f32 %v304_v1, %v304_v1 }
 0x468   :  { %322 = vmatmul.f32.vlgmr.msra.gmra.mxu0 %v305_v2 }
 0x4e5   :  { %v323_v17 = vpop.f32.mrf.mxu0 }
 0x4e6   :  { %v324_v18 = vadd.f32 1e-05, %v323_v17 }
 0x4e8   :  { %423 = vrsqrt.f32 %v324_v18  ;;  %vm332_vm5 = vweird.f32 %v324_v18 }
 0x4ee   :  { %v424_v19 = vpop.eup %423 }
 0x4ef   :  { %v327_v20 = vmul.f32 %v424_v19, %v324_v18  ;;  %vm333_vm4 = vweird.f32 %v424_v19 }
 0x4f0   :  { %vm334_vm6 = vmor %vm332_vm5, %vm333_vm4 }
 0x4f1   :  { %v328_v21 = vmul.f32 %v424_v19, %v327_v20 }
 0x4f3   :  { %v329_v22 = vmul.f32 0.5, %v328_v21 }
 0x4f5   :  { %v330_v23 = vsub.f32 1.5, %v329_v22 }
 0x4f7   :  { %v331_v24 = vmul.f32 %v424_v19, %v330_v23 }
 0x4f9   :  { %v335_v26 = vsel %vm334_vm6, %v424_v19, %v331_v24 }
 0x4fa   :  { %v336_v27 = vmul.f32 %v335_v26, %v304_v1 }
 0x4fc   :  { %v338_v29 = vmul.f32 %v403_v25, %v336_v27 }
 0x4fe   :  { %v340_v30 = vadd.f32 %v404_v28, %v338_v29 }
 0x500   :  { %358 = vmatmul.f32.vlgmr.msra.gmra.mxu2 %v340_v30 }
 0x583   :  { %v359_v33 = vpop.f32.mrf.mxu2 }
 0x584   :  { %v360_v34 = vadd.f32 %v405_v31, %v359_v33 }
 0x586   :  { %v364_v36 = vadd.f32 %v363_v35, %v360_v34 }
 0x588   :  { %365 = vst [vmem:[#allocation7] sm:$0x3] %v364_v36 }
 0x589   :  { %376 = dma.vmem_to_hbm [thread:$0]  %s372_s1, 32, %s374_s23, [#allocation4]  }
 0x58a   :  { %501 = dma.done.wait [#allocation4], 32  }
 0x58b   :  { %502 = vsyncadd [#allocation4], 4294967264 }
 0x58c   :  { %381 = vsyncpa [#allocation3], 1 }
 0x58d   :  { %382 = vsyncpa [#allocation6], 1 }
 0x58e   :  { %383 = vsyncpa [#allocation4], 1 }

</bundles_post_ra>
